<compile_context>
chip_gen: v6e
topology: v6e:2x2x1
jax: 0.10.0
libtpu: 0.0.40
codegen_flags: <defaults>
</compile_context>

<pallas_src>
import jax
import jax.numpy as jnp
from jax.experimental import pallas as pl
from jax.experimental.pallas import tpu as pltpu


def _round_up(v, m):
    return (v + m - 1) // m * m


def linear_relu_kernel(x_ref, w_ref, o_ref, acc_ref):
    # x_ref: (tm, tk) f32   w_ref: (tn, tk) bf16 (torch layout, contract dim last)
    # o_ref: (tm, tn) f32   acc_ref: (tm, tn) f32 VMEM scratch
    @pl.when(pl.program_id(2) == 0)
    def _init():
        acc_ref[...] = jnp.zeros_like(acc_ref)

    # bf16 x bf16 -> f32 accumulate on the MXU; contraction over in_size
    # (dim 1 of both operands) so no transpose of the torch-layout weight.
    acc_ref[...] += jax.lax.dot_general(
        x_ref[...].astype(jnp.bfloat16),
        w_ref[...],
        dimension_numbers=(((1,), (1,)), ((), ())),
        preferred_element_type=jnp.float32,
    )

    @pl.when(pl.program_id(2) == pl.num_programs(2) - 1)
    def _finalize():
        # ReLU on the f32 accumulator (no bf16 elementwise work).
        o_ref[...] = jnp.maximum(acc_ref[...], 0.0).astype(o_ref.dtype)


def prepare_weight(weight_f32):
    """One-time (init) weight prep: cast to bf16 and zero-pad the hidden (lane)
    dim to a multiple of 128 so output stores are lane-dense."""
    hidden, _ = weight_f32.shape
    hidden_pad = _round_up(hidden, 128)
    w = weight_f32.astype(jnp.bfloat16)
    if hidden_pad != hidden:
        w = jnp.pad(w, ((0, hidden_pad - hidden), (0, 0)))
    return w


def client_model_forward(x, w_prepared, hidden_size):
    """relu(x @ weight.T), with weight pre-prepared by prepare_weight()."""
    B, in_size = x.shape
    hidden_pad, in_size_w = w_prepared.shape
    assert in_size == in_size_w

    # Tile sizes sized for v7x's 64 MiB VMEM (32 MiB scoped default) with
    # double-buffering; degenerate to whole-array blocks at small shapes.
    tm = B if B <= 256 else 256
    tn = hidden_pad if hidden_pad <= 512 else 512
    tk = in_size if in_size <= 512 else 512
    grid = (pl.cdiv(B, tm), pl.cdiv(hidden_pad, tn), pl.cdiv(in_size, tk))

    cost = pl.CostEstimate(
        flops=2 * B * in_size * hidden_pad,
        transcendentals=0,
        bytes_accessed=(x.size * x.dtype.itemsize
                        + w_prepared.size * w_prepared.dtype.itemsize
                        + B * hidden_pad * 4),
    )

    out = pl.pallas_call(
        linear_relu_kernel,
        out_shape=jax.ShapeDtypeStruct((B, hidden_pad), jnp.float32),
        grid_spec=pltpu.PrefetchScalarGridSpec(
            num_scalar_prefetch=0,
            grid=grid,
            in_specs=[
                pl.BlockSpec((tm, tk), lambda i, j, k: (i, k)),   # x tile
                pl.BlockSpec((tn, tk), lambda i, j, k: (j, k)),   # weight tile
            ],
            out_specs=pl.BlockSpec((tm, tn), lambda i, j, k: (i, j)),
            scratch_shapes=[pltpu.VMEM((tm, tn), jnp.float32)],
        ),
        compiler_params=pltpu.CompilerParams(
            dimension_semantics=("parallel", "parallel", "arbitrary"),
            vmem_limit_bytes=32 * 1024 * 1024,
        ),
        cost_estimate=cost,
    )(x, w_prepared)

    if hidden_pad != hidden_size:
        out = out[:, :hidden_size]
    return out


def xavier_uniform(key, shape):
    # shape = (fan_out, fan_in) for a torch Linear weight; gain = 1.
    fan_out, fan_in = shape
    bound = (6.0 / (fan_in + fan_out)) ** 0.5
    return jax.random.uniform(key, shape, minval=-bound, maxval=bound,
                              dtype=jnp.float32)


if __name__ == "__main__":
    # Small shapes consistent with ClientModel(in_size, hidden_size);
    # hidden % 128 == 0 keeps the output lane dim dense (no masked stores).
    batch, in_size, hidden_size = 8, 128, 256

    key = jax.random.PRNGKey(0)
    kx, kw = jax.random.split(key)

    x = jax.random.normal(kx, (batch, in_size), dtype=jnp.float32)
    weight = xavier_uniform(kw, (hidden_size, in_size))  # torch nn.Linear layout
    w_prep = prepare_weight(weight)                      # one-time init step

    out = client_model_forward(x, w_prep, hidden_size)
    out = jax.block_until_ready(out)
    assert out.shape == (batch, hidden_size)

    # Strict check vs. a reference with the same bf16-rounded inputs / f32 accum.
    x_bf = x.astype(jnp.bfloat16).astype(jnp.float32)
    w_bf = w_prep.astype(jnp.float32)[:hidden_size]
    ref_matched = jnp.maximum(
        jax.lax.dot_general(x_bf, w_bf, (((1,), (1,)), ((), ())),
                            precision=jax.lax.Precision.HIGHEST),
        0.0)
    assert jnp.allclose(out, ref_matched, atol=1e-3, rtol=1e-3)

    # Loose sanity check vs. the original f32 module semantics
    # (difference is only bf16 rounding of the matmul inputs).
    ref_f32 = jnp.maximum(x @ weight.T, 0.0)
    assert jnp.allclose(out, ref_f32, atol=5e-2, rtol=5e-2)

    # TODO(synk): ClientModel.save() (torch.save of the state_dict) is host-side
    # checkpoint I/O and has no Pallas equivalent.
    print("KERNEL_OK")
</pallas_src>

<mosaic_0001>
module attributes {stable_mosaic.version = 11 : i64} {
  func.func @linear_relu_kernel(%arg0: i32, %arg1: i32, %arg2: i32, %arg3: memref<8x128xf32, #tpu.memory_space<vmem>>, %arg4: memref<256x128xbf16, #tpu.memory_space<vmem>>, %arg5: memref<8x256xf32, #tpu.memory_space<vmem>>, %arg6: memref<8x256xf32, #tpu.memory_space<vmem>>) attributes {dimension_semantics = [#tpu.dimension_semantics<parallel>, #tpu.dimension_semantics<parallel>, #tpu.dimension_semantics<arbitrary>], iteration_bounds = array<i64: 1, 1, 1>, scalar_prefetch = 0 : i64, scratch_operands = 1 : i64, tpu.core_type = #tpu.core_type<tc>, window_params = [{transform_indices = @transform_0, window_bounds = array<i64: 8, 128>}, {transform_indices = @transform_1, window_bounds = array<i64: 256, 128>}, {transform_indices = @transform_2, window_bounds = array<i64: 8, 256>}]} {
    %c0_i32 = arith.constant 0 : i32
    %0 = arith.cmpi eq, %arg2, %c0_i32 : i32
    %1 = arith.extui %0 : i1 to i32
    %c0_i32_0 = arith.constant 0 : i32
    %2 = arith.cmpi ne, %1, %c0_i32_0 : i32
    scf.if %2 {
      %cst_10 = arith.constant 0.000000e+00 : f32
      %13 = vector.broadcast %cst_10 : f32 to vector<8x256xf32>
      %c0_11 = arith.constant 0 : index
      %c0_12 = arith.constant 0 : index
      %14 = vector.load %arg6[%c0_11, %c0_12] : memref<8x256xf32, #tpu.memory_space<vmem>>, vector<8x256xf32>
      tpu.vector_store %arg6[%c0_11, %c0_12], %13 {strides = array<i32>} : memref<8x256xf32, #tpu.memory_space<vmem>>, vector<8x256xf32>,
    } else {
    }
    %c0 = arith.constant 0 : index
    %c0_1 = arith.constant 0 : index
    %3 = vector.load %arg6[%c0, %c0_1] : memref<8x256xf32, #tpu.memory_space<vmem>>, vector<8x256xf32>
    %c0_2 = arith.constant 0 : index
    %c0_3 = arith.constant 0 : index
    %4 = vector.load %arg3[%c0_2, %c0_3] : memref<8x128xf32, #tpu.memory_space<vmem>>, vector<8x128xf32>
    %5 = arith.truncf %4 : vector<8x128xf32> to vector<8x128xbf16>
    %c0_4 = arith.constant 0 : index
    %c0_5 = arith.constant 0 : index
    %6 = vector.load %arg4[%c0_4, %c0_5] : memref<256x128xbf16, #tpu.memory_space<vmem>>, vector<256x128xbf16>
    %cst = arith.constant dense<0.000000e+00> : vector<8x256xf32>
    %7 = tpu.matmul %5, %6, %cst {dimension_numbers = #tpu.dot_dimension_numbers<[1], [1], [0], [0], [0, 0, 1, 0], [], []>} : vector<8x128xbf16>, vector<256x128xbf16>, vector<8x256xf32> -> vector<8x256xf32>
    %8 = arith.addf %3, %7 : vector<8x256xf32>
    %c0_6 = arith.constant 0 : index
    %c0_7 = arith.constant 0 : index
    %9 = vector.load %arg6[%c0_6, %c0_7] : memref<8x256xf32, #tpu.memory_space<vmem>>, vector<8x256xf32>
    tpu.vector_store %arg6[%c0_6, %c0_7], %8 {strides = array<i32>} : memref<8x256xf32, #tpu.memory_space<vmem>>, vector<8x256xf32>,
    %c0_i32_8 = arith.constant 0 : i32
    %10 = arith.cmpi eq, %arg2, %c0_i32_8 : i32
    %11 = arith.extui %10 : i1 to i32
    %c0_i32_9 = arith.constant 0 : i32
    %12 = arith.cmpi ne, %11, %c0_i32_9 : i32
    scf.if %12 {
      %c0_10 = arith.constant 0 : index
      %c0_11 = arith.constant 0 : index
      %13 = vector.load %arg6[%c0_10, %c0_11] : memref<8x256xf32, #tpu.memory_space<vmem>>, vector<8x256xf32>
      %cst_12 = arith.constant 0.000000e+00 : f32
      %14 = vector.broadcast %cst_12 : f32 to vector<8x256xf32>
      %15 = arith.maximumf %13, %14 : vector<8x256xf32>
      %c0_13 = arith.constant 0 : index
      %c0_14 = arith.constant 0 : index
      %16 = vector.load %arg5[%c0_13, %c0_14] : memref<8x256xf32, #tpu.memory_space<vmem>>, vector<8x256xf32>
      tpu.vector_store %arg5[%c0_13, %c0_14], %15 {strides = array<i32>} : memref<8x256xf32, #tpu.memory_space<vmem>>, vector<8x256xf32>,
    } else {
    }
    return
  }
  func.func @transform_0(%arg0: i32, %arg1: i32, %arg2: i32) -> (i32, i32) {
    %c0_i32 = arith.constant 0 : i32
    return %arg0, %arg2 : i32, i32
  }
  func.func @transform_1(%arg0: i32, %arg1: i32, %arg2: i32) -> (i32, i32) {
    %c0_i32 = arith.constant 0 : i32
    return %arg1, %arg2 : i32, i32
  }
  func.func @transform_2(%arg0: i32, %arg1: i32, %arg2: i32) -> (i32, i32) {
    %c0_i32 = arith.constant 0 : i32
    return %arg0, %arg1 : i32, i32
  }
}

</mosaic_0001>

<bundles_post_ra>
// kernel: tpu_custom_call.1
= control target key start
LH: loop header
LB: loop body
LE: loop exit
PB: predicated region body
PF: predicated region fallthrough
CT: control target
= control target key end

     0   :  { %7 = vsyncpa [#allocation4], 0  ;;  %s397_s0 = inlined_call_operand.hbm [shape: f32[8,128], index: 0, kind: input, shape index: {}]   ;;  %s398_s1 = inlined_call_operand.hbm [shape: bf16[256,128], index: 1, kind: input, shape index: {}]   ;;  %s399_s2 = inlined_call_operand.hbm [shape: f32[8,256], index: 2, kind: output, shape index: {}]  }
   0x1   :  { %8 = vsyncpa [#allocation7], 0 }
   0x2   :  { %9 = vsyncpa [#allocation5], 0  ;;  %s368_s9 = smov [#allocation3]   ;;  %s369_s11 = smov [#allocation6]  }
   0x3   :  { %s16_s10 = sshll.u32 %s368_s9, 4  ;;  %s25_s12 = sshll.u32 %s369_s11, 4  ;;  %s17_s10 = int_to_ptr.vmem [resolvable:$true] %s16_s10  ;;  %s26_s12 = int_to_ptr.vmem [resolvable:$true] %s25_s12 }
   0x4   :  { %s310_s13 = scalar_lea.vmem %s17_s10, 128  ;;  %p315_p1 = scmp.lt.s32.totalorder %s17_s10, %s17_s10 }
   0x5   :  { %p311_p0 = scmp.ne.s32.totalorder %s17_s10, %s310_s13  ;;  %p316_p2 = scmp.lt.s32.totalorder %s310_s13, %s310_s13 }
   0x7   :  { %p317_p3 = por %p316_p2, %p315_p1 }
   0x9   :  { %p318_p4 = pnand %p317_p3, %p311_p0 }
   0xb   :  { %321 = shalt.err (!%p318_p4)
}
   0xc   :  { %19 = dma.hbm_to_vmem [thread:$0]  %s397_s0, 128, %s17_s10, [#allocation4]  }
   0xd   :  { %s330_s16 = scalar_lea.vmem %s26_s12, 2048  ;;  %p335_p6 = scmp.lt.s32.totalorder %s26_s12, %s26_s12 }
   0xe   :  { %p331_p5 = scmp.ne.s32.totalorder %s26_s12, %s330_s16  ;;  %p336_p7 = scmp.lt.s32.totalorder %s330_s16, %s330_s16 }
  0x10   :  { %p337_p8 = por %p336_p7, %p335_p6 }
  0x12   :  { %p338_p9 = pnand %p337_p8, %p331_p5 }
  0x14   :  { %341 = shalt.err (!%p338_p9)
}
  0x15   :  { %s370_s17 = smov 64   ;;  %s371_s18 = smov 4  }
  0x16   :  { %31 = dma.hbm_to_vmem [thread:$0]  %s398_s1, 2048, %s26_s12, [#allocation7], %s370_s17, %s370_s17, %s371_s18  }
  0x17   :  { %362 = dma.done.wait [#allocation4], 128  }
  0x18   :  { %363 = vsyncadd [#allocation4], 4294967168 }
  0x19   :  { %364 = dma.done.wait [#allocation7], 2048  }
  0x1a   :  { %365 = vsyncadd [#allocation7], 4294965248  ;;  %v286_v0 = vld [vmem:[#allocation6 + $0x78] sm:$0xff]   ;;  %v288_v2 = vld [vmem:[#allocation6 + $0x70] sm:$0xff]   ;;  %s372_s0 = smov [#allocation8]  }
  0x1b   :  { %v287_v1 = vld [vmem:[#allocation6 + $0x38] sm:$0xff]   ;;  %263 = vmatprep.subr.bf16.mxu0 %v286_v0  ;;  %v289_v3 = vld [vmem:[#allocation6 + $0x30] sm:$0xff]   ;;  %v290_v4 = vld [vmem:[#allocation6 + $0x68] sm:$0xff]   ;;  %s237_s1 = sshll.u32 %s372_s0, 4  ;;  %s238_s1 = int_to_ptr.vmem [resolvable:$true] %s237_s1 }
  0x1c   :  { %264 = vmatpush3.bf16.xpose.msra.mxu0 %v287_v1  ;;  %v291_v5 = vld [vmem:[#allocation6 + $0x28] sm:$0xff]   ;;  %v292_v6 = vld [vmem:[#allocation6 + $0x60] sm:$0xff]   ;;  %v47_v7 = vld [vmem:[#allocation3] sm:$0xff]  ;;  %s342_s21 = scalar_lea.vmem %s238_s1, 256  ;;  %p347_p11 = scmp.lt.s32.totalorder %s238_s1, %s238_s1 }
  0x1d   :  { %265 = vmatprep.subr.bf16.mxu0 %v288_v2  ;;  %v48_v8 = vpack.c.bf16 %v47_v7, %v47_v7  ;;  %v293_v9 = vld [vmem:[#allocation6 + $0x20] sm:$0xff]   ;;  %v294_v10 = vld [vmem:[#allocation6 + $0x58] sm:$0xff]   ;;  %v296_v12 = vld [vmem:[#allocation6 + $0x50] sm:$0xff]   ;;  %p343_p10 = scmp.ne.s32.totalorder %s238_s1, %s342_s21  ;;  %p348_p12 = scmp.lt.s32.totalorder %s342_s21, %s342_s21 }
  0x1e   :  { %v295_v11 = vld [vmem:[#allocation6 + $0x18] sm:$0xff]   ;;  %v297_v13 = vld [vmem:[#allocation6 + $0x10] sm:$0xff]   ;;  %v298_v14 = vld [vmem:[#allocation6 + $0x48] sm:$0xff]  }
  0x1f   :  { %279 = vmatprep.mubr.bf16.mxu0 %v48_v8  ;;  %v299_v15 = vld [vmem:[#allocation6 + $0x8] sm:$0xff]   ;;  %v300_v16 = vld [vmem:[#allocation6 + $0x40] sm:$0xff]   ;;  %p349_p13 = por %p348_p12, %p347_p11 }
  0x20   :  { %v301_v17 = vld [vmem:[#allocation6] sm:$0xff]  }
  0x21   :  { %p350_p0 = pnand %p349_p13, %p343_p10 }
  0x24   :  { %266 = vmatpush3.bf16.xpose.msra.mxu0 %v289_v3 }
  0x25   :  { %267 = vmatprep.subr.bf16.mxu0 %v290_v4 }
  0x2c   :  { %268 = vmatpush3.bf16.xpose.msra.mxu0 %v291_v5 }
  0x2d   :  { %269 = vmatprep.subr.bf16.mxu0 %v292_v6 }
  0x34   :  { %270 = vmatpush3.bf16.xpose.msra.mxu0 %v293_v9 }
  0x35   :  { %271 = vmatprep.subr.bf16.mxu0 %v294_v10 }
  0x3c   :  { %272 = vmatpush3.bf16.xpose.msra.mxu0 %v295_v11 }
  0x3d   :  { %273 = vmatprep.subr.bf16.mxu0 %v296_v12 }
  0x44   :  { %274 = vmatpush3.bf16.xpose.msra.mxu0 %v297_v13 }
  0x45   :  { %275 = vmatprep.subr.bf16.mxu0 %v298_v14 }
  0x4c   :  { %276 = vmatpush3.bf16.xpose.msra.mxu0 %v299_v15 }
  0x4d   :  { %277 = vmatprep.subr.bf16.mxu0 %v300_v16 }
  0x54   :  { %278 = vmatpush3.bf16.xpose.msra.mxu0 %v301_v17 }
  0x5b   :  { %280 = vmatmul.mubr.bf16.vlgmr.msra.gmra.mxu0 %v48_v8 }
 0x11b   :  { %v211_v18 = vpop.f32.mrf.mxu0 }
 0x11c   :  { %v227_v19 = vmax.f32 %v211_v18, 0.0 }
 0x11d   :  { %v213_v20 = vpop.f32.mrf.mxu0 }
 0x11e   :  { %229 = vst [vmem:[#allocation8] sm:$0xff] %v227_v19  ;;  %v228_v21 = vmax.f32 %v213_v20, 0.0 }
 0x11f   :  { %v215_v22 = vpop.f32.mrf.mxu0 }
 0x120   :  { %230 = vst [vmem:[#allocation8 + $0x8] sm:$0xff] %v228_v21 }
 0x121   :  { %v216_v23 = vpop.f32.mrf.mxu0 }
 0x122   :  { %353 = shalt.err (!%p350_p0)
}
 0x123   :  { %240 = dma.vmem_to_hbm [thread:$0]  %s238_s1, 256, %s399_s2, [#allocation5]  }
 0x124   :  { %366 = dma.done.wait [#allocation5], 256  }
 0x125   :  { %367 = vsyncadd [#allocation5], 4294967040 }
 0x126   :  { %244 = vsyncpa [#allocation4], 1 }
 0x127   :  { %245 = vsyncpa [#allocation7], 1 }
 0x128   :  { %246 = vsyncpa [#allocation5], 1 }

</bundles_post_ra>
